<compile_context>
chip_gen: v7x
topology: tpu7x:2x2x1
jax: 0.10.0
libtpu: 0.0.40
codegen_flags: <defaults>
</compile_context>

<pallas_src>
import functools

import jax
import jax.numpy as jnp
from jax import lax
from jax.experimental import pallas as pl
from jax.experimental.pallas import tpu as pltpu


NUM_CHRS = 95
HIDDEN = 32
NUM_FACTORS = 6

LANE = 128
MAX_TILE_B = 8192  # rows of x per grid step; fits scoped-VMEM defaults on v5e/v6e/v7x


def _round_up(n, m):
    return ((n + m - 1) // m) * m


def _silu(x):
    # x * sigmoid(x), computed with exp + divide (always supported by Mosaic).
    # pl.reciprocal(..., approx=True) could move the divide to the EUP slot,
    # but the kernel is memory-bound and exactness is preferred here.
    return x * (1.0 / (1.0 + jnp.exp(-x)))


def _pick_tile_b(batch: int) -> int:
    """Lane-friendly batch tile.

    - batch <= 2048: one full-extent block (block dims == array dims is always
      legal; at this size everything is overhead-dominated anyway).
    - larger: split into >= 2 grid steps (keeps both v7x TensorCores busy under
      dimension_semantics=("parallel",)), capped at MAX_TILE_B rows so each
      step moves a multi-MiB x tile and the fixed per-step overhead is <10%.
    """
    if batch <= 2048:
        return batch
    b_lane = _round_up(batch, LANE)
    return min(MAX_TILE_B, _round_up(pl.cdiv(b_lane, 2), LANE))


def factor_model_kernel(x_ref, w1_ref, w2_ref, outT_ref):
    # x_ref:    (TILE_B, NUM_CHRS)     streamed, natural batch-major layout
    # w1_ref:   (HIDDEN, NUM_CHRS)     resident (PyTorch nn.Linear weight layout)
    # w2_ref:   (NUM_FACTORS, HIDDEN)  resident
    # outT_ref: (NUM_FACTORS, TILE_B)  lane-dense output (batch on lanes)
    x = x_ref[...]
    w1 = w1_ref[...]

    # h^T = W1 @ x^T: contract on the feature dim of BOTH operands so the result
    # lands batch-on-lanes directly; the operand relayout (vxpose) rides the XLU
    # and hides under the x DMA.
    h = lax.dot_general(
        w1, x,
        dimension_numbers=(((1,), (1,)), ((), ())),
        preferred_element_type=jnp.float32,
    )                                                   # (HIDDEN, TILE_B), f32
    h = _silu(h)                                        # SiLU in f32 (v5e-safe)
    h = h.astype(w2_ref.dtype)

    y = jnp.dot(w2_ref[...], h,
                preferred_element_type=jnp.float32)     # (NUM_FACTORS, TILE_B)
    y = _silu(y)                                        # SiLU in f32

    # Final layer is Identity; the (out, last_hidden) duplication happens in the
    # wrapper so only one copy is written back to HBM.
    outT_ref[...] = y.astype(outT_ref.dtype)


@jax.jit
def factor_model_forward(x, w1, w2):
    """FactorModel forward.

    x:  (B, NUM_CHRS)           any float dtype (pass bf16 to halve HBM reads)
    w1: (HIDDEN, NUM_CHRS)      PyTorch nn.Linear.weight layout (out, in)
    w2: (NUM_FACTORS, HIDDEN)   PyTorch nn.Linear.weight layout (out, in)

    Returns (out, last_hidden), each (B, NUM_FACTORS) float32; they are the
    same tensor (the last layer of the MLP is Identity).
    """
    B = x.shape[0]
    tile_b = _pick_tile_b(B)
    grid = (pl.cdiv(B, tile_b),)

    # Weights are tiny (95*32 + 32*6 elems); casting them to x's dtype is free.
    w1c = w1.astype(x.dtype)
    w2c = w2.astype(x.dtype)

    itemsize = jnp.dtype(x.dtype).itemsize
    cost = pl.CostEstimate(
        flops=2 * B * (NUM_CHRS * HIDDEN + HIDDEN * NUM_FACTORS),
        transcendentals=B * (HIDDEN + NUM_FACTORS),
        bytes_accessed=(B * NUM_CHRS * itemsize                     # x read
                        + B * NUM_FACTORS * 4                       # out write
                        + (NUM_CHRS * HIDDEN + HIDDEN * NUM_FACTORS) * itemsize),
    )

    outT = pl.pallas_call(
        factor_model_kernel,
        out_shape=jax.ShapeDtypeStruct((NUM_FACTORS, B), jnp.float32),
        grid_spec=pltpu.PrefetchScalarGridSpec(
            num_scalar_prefetch=0,
            grid=grid,
            in_specs=[
                # Streamed x tile, natural (batch-major) layout. Ragged last
                # block is fine: no reduction crosses the batch dimension and
                # the corresponding output lanes are masked on store.
                pl.BlockSpec((tile_b, NUM_CHRS), lambda i: (i, 0)),
                pl.BlockSpec((HIDDEN, NUM_CHRS), lambda i: (0, 0)),     # resident W1
                pl.BlockSpec((NUM_FACTORS, HIDDEN), lambda i: (0, 0)),  # resident W2
            ],
            out_specs=pl.BlockSpec((NUM_FACTORS, tile_b), lambda i: (0, i)),
        ),
        compiler_params=pltpu.CompilerParams(
            dimension_semantics=("parallel",),
        ),
        cost_estimate=cost,
    )(x, w1c, w2c)

    # Tiny (B*6 elems) transpose back to the natural output layout; negligible
    # next to the B*95 x read.  out and last_hidden are the same tensor.
    out = jnp.transpose(outT)                            # (B, NUM_FACTORS)
    return out, out


def reference_forward(x, w1, w2):
    """Pure-JAX reference matching the PyTorch module (weights in (out, in) layout)."""
    w1c = w1.astype(x.dtype)
    w2c = w2.astype(x.dtype)
    h = jax.nn.silu(jnp.dot(x, w1c.T, preferred_element_type=jnp.float32,
                            precision=lax.Precision.HIGHEST))
    h = h.astype(x.dtype)
    y = jax.nn.silu(jnp.dot(h, w2c.T, preferred_element_type=jnp.float32,
                            precision=lax.Precision.HIGHEST))
    y = y.astype(jnp.float32)
    return y, y


if __name__ == "__main__":
    key = jax.random.PRNGKey(0)
    k_x, k_w1, k_w2 = jax.random.split(key, 3)

    B = 16  # small demo batch; wrapper handles any B (ragged tiles, multi-step grids)
    x = jax.random.normal(k_x, (B, NUM_CHRS), dtype=jnp.float32)

    # Deterministic init mimicking nn.Linear's uniform(-1/sqrt(fan_in), 1/sqrt(fan_in)),
    # stored in PyTorch (out, in) weight layout.
    lim1 = 1.0 / jnp.sqrt(jnp.float32(NUM_CHRS))
    lim2 = 1.0 / jnp.sqrt(jnp.float32(HIDDEN))
    w1 = jax.random.uniform(k_w1, (HIDDEN, NUM_CHRS), jnp.float32, -lim1, lim1)
    w2 = jax.random.uniform(k_w2, (NUM_FACTORS, HIDDEN), jnp.float32, -lim2, lim2)

    # Tolerances: the in-kernel (Mosaic) f32 matmul and XLA's default f32 matmul
    # may use a different number of bf16 MXU passes, so we compare against a
    # HIGHEST-precision reference with a tolerance that covers either choice.
    F32_TOL = 5e-3
    BF16_TOL = 2e-2

    # f32 path (matches the PyTorch module).
    out, last_hidden = factor_model_forward(x, w1, w2)
    out = jax.block_until_ready(out)
    last_hidden = jax.block_until_ready(last_hidden)
    ref_out, ref_hidden = reference_forward(x, w1, w2)
    assert out.shape == (B, NUM_FACTORS)
    assert last_hidden.shape == (B, NUM_FACTORS)
    assert jnp.allclose(out, ref_out, atol=F32_TOL, rtol=F32_TOL)
    assert jnp.allclose(last_hidden, ref_hidden, atol=F32_TOL, rtol=F32_TOL)

    # Multi-step grid + ragged last block (B not a multiple of the tile).
    B2 = 2500
    x2 = jax.random.normal(k_x, (B2, NUM_CHRS), dtype=jnp.float32)
    out2, _ = factor_model_forward(x2, w1, w2)
    out2 = jax.block_until_ready(out2)
    ref2, _ = reference_forward(x2, w1, w2)
    assert out2.shape == (B2, NUM_FACTORS)
    assert jnp.allclose(out2, ref2, atol=F32_TOL, rtol=F32_TOL)

    # bf16-stored-x path (halves HBM read bytes; f32 MXU accumulation).
    x_bf = x.astype(jnp.bfloat16)
    out_bf, _ = factor_model_forward(x_bf, w1, w2)
    out_bf = jax.block_until_ready(out_bf)
    ref_bf, _ = reference_forward(x_bf, w1, w2)
    assert jnp.allclose(out_bf, ref_bf, atol=BF16_TOL, rtol=BF16_TOL)

    print("KERNEL_OK")
</pallas_src>

<mosaic_0001>
module attributes {stable_mosaic.version = 11 : i64} {
  func.func @factor_model_kernel(%arg0: i32, %arg1: memref<16x95xf32, #tpu.memory_space<vmem>>, %arg2: memref<32x95xf32, #tpu.memory_space<vmem>>, %arg3: memref<6x32xf32, #tpu.memory_space<vmem>>, %arg4: memref<6x16xf32, #tpu.memory_space<vmem>>) attributes {dimension_semantics = [#tpu.dimension_semantics<parallel>], iteration_bounds = array<i64: 1>, scalar_prefetch = 0 : i64, scratch_operands = 0 : i64, tpu.core_type = #tpu.core_type<tc>, window_params = [{transform_indices = @transform_0, window_bounds = array<i64: 16, 95>}, {pipeline_mode = #tpu.pipeline_mode<synchronous>, transform_indices = @transform_1, window_bounds = array<i64: 32, 95>}, {pipeline_mode = #tpu.pipeline_mode<synchronous>, transform_indices = @transform_2, window_bounds = array<i64: 6, 32>}, {transform_indices = @transform_3, window_bounds = array<i64: 6, 16>}]} {
    %c0 = arith.constant 0 : index
    %c0_0 = arith.constant 0 : index
    %0 = vector.load %arg1[%c0, %c0_0] : memref<16x95xf32, #tpu.memory_space<vmem>>, vector<16x95xf32>
    %c0_1 = arith.constant 0 : index
    %c0_2 = arith.constant 0 : index
    %1 = vector.load %arg2[%c0_1, %c0_2] : memref<32x95xf32, #tpu.memory_space<vmem>>, vector<32x95xf32>
    %cst = arith.constant dense<0.000000e+00> : vector<32x16xf32>
    %2 = tpu.matmul %1, %0, %cst {dimension_numbers = #tpu.dot_dimension_numbers<[1], [1], [0], [0], [0, 0, 1, 0], [], []>} : vector<32x95xf32>, vector<16x95xf32>, vector<32x16xf32> -> vector<32x16xf32>
    %cst_3 = arith.constant 0.000000e+00 : f32
    %3 = vector.broadcast %cst_3 : f32 to vector<32x16xf32>
    %4 = arith.subf %3, %2 : vector<32x16xf32>
    %5 = math.exp %4 : vector<32x16xf32>
    %cst_4 = arith.constant 1.000000e+00 : f32
    %6 = vector.broadcast %cst_4 : f32 to vector<32x16xf32>
    %7 = arith.addf %6, %5 : vector<32x16xf32>
    %cst_5 = arith.constant 1.000000e+00 : f32
    %8 = vector.broadcast %cst_5 : f32 to vector<32x16xf32>
    %9 = arith.divf %8, %7 : vector<32x16xf32>
    %10 = arith.mulf %2, %9 : vector<32x16xf32>
    %c0_6 = arith.constant 0 : index
    %c0_7 = arith.constant 0 : index
    %11 = vector.load %arg3[%c0_6, %c0_7] : memref<6x32xf32, #tpu.memory_space<vmem>>, vector<6x32xf32>
    %cst_8 = arith.constant dense<0.000000e+00> : vector<6x16xf32>
    %12 = tpu.matmul %11, %10, %cst_8 {dimension_numbers = #tpu.dot_dimension_numbers<[1], [0], [0], [1], [0, 0, 1, 1], [], []>} : vector<6x32xf32>, vector<32x16xf32>, vector<6x16xf32> -> vector<6x16xf32>
    %cst_9 = arith.constant 0.000000e+00 : f32
    %13 = vector.broadcast %cst_9 : f32 to vector<6x16xf32>
    %14 = arith.subf %13, %12 : vector<6x16xf32>
    %15 = math.exp %14 : vector<6x16xf32>
    %cst_10 = arith.constant 1.000000e+00 : f32
    %16 = vector.broadcast %cst_10 : f32 to vector<6x16xf32>
    %17 = arith.addf %16, %15 : vector<6x16xf32>
    %cst_11 = arith.constant 1.000000e+00 : f32
    %18 = vector.broadcast %cst_11 : f32 to vector<6x16xf32>
    %19 = arith.divf %18, %17 : vector<6x16xf32>
    %20 = arith.mulf %12, %19 : vector<6x16xf32>
    %c0_12 = arith.constant 0 : index
    %c0_13 = arith.constant 0 : index
    %21 = vector.load %arg4[%c0_12, %c0_13] : memref<6x16xf32, #tpu.memory_space<vmem>>, vector<6x16xf32>
    tpu.vector_store %arg4[%c0_12, %c0_13], %20 {strides = array<i32>} : memref<6x16xf32, #tpu.memory_space<vmem>>, vector<6x16xf32>,
    return
  }
  func.func @transform_0(%arg0: i32) -> (i32, i32) {
    %c0_i32 = arith.constant 0 : i32
    %c0_i32_0 = arith.constant 0 : i32
    return %arg0, %c0_i32 : i32, i32
  }
  func.func @transform_1(%arg0: i32) -> (i32, i32) {
    %c0_i32 = arith.constant 0 : i32
    %c0_i32_0 = arith.constant 0 : i32
    %c0_i32_1 = arith.constant 0 : i32
    return %c0_i32, %c0_i32_0 : i32, i32
  }
  func.func @transform_2(%arg0: i32) -> (i32, i32) {
    %c0_i32 = arith.constant 0 : i32
    %c0_i32_0 = arith.constant 0 : i32
    %c0_i32_1 = arith.constant 0 : i32
    return %c0_i32, %c0_i32_0 : i32, i32
  }
  func.func @transform_3(%arg0: i32) -> (i32, i32) {
    %c0_i32 = arith.constant 0 : i32
    %c0_i32_0 = arith.constant 0 : i32
    return %c0_i32, %arg0 : i32, i32
  }
}

</mosaic_0001>

<bundles_post_ra>
// kernel: factor_model_forward.1
= control target key start
LH: loop header
LB: loop body
LE: loop exit
PB: predicated region body
PF: predicated region fallthrough
CT: control target
= control target key end

     0   :  { %8 = vsyncpa [#allocation3], 0  ;;  %s504_s0 = inlined_call_operand.hbm [shape: f32[16,95], index: 0, kind: input, shape index: {}]   ;;  %s505_s1 = inlined_call_operand.hbm [shape: f32[32,95], index: 1, kind: input, shape index: {}]   ;;  %s506_s2 = inlined_call_operand.hbm [shape: f32[6,32], index: 2, kind: input, shape index: {}]   ;;  %s507_s3 = inlined_call_operand.vmem [shape: f32[6,16], index: 3, kind: output, shape index: {}]  }
   0x1   :  { %9 = vsyncpa [#allocation5], 0  ;;  %s430_s12 = smov [#allocation4]   ;;  %s431_s14 = smov [#allocation2]  }
   0x2   :  { %s27_s13 = sshll.u32 %s430_s12, 4  ;;  %s15_s15 = sshll.u32 %s431_s14, 4  ;;  %s28_s13 = int_to_ptr.vmem [resolvable:$true] %s27_s13  ;;  %s458_s15 = int_to_ptr.vmem [resolvable:$true] %s15_s15 }
   0x3   :  { %s360_s18 = scalar_lea.hbm %s505_s1, 512 }
   0x4   :  { %p361_p0 = scmp.ne.s32.totalorder %s505_s1, %s360_s18  ;;  %p364_p1 = scmp.lt.u32.totalorder %s360_s18, %s505_s1 }
   0x6   :  { %p366_p2 = pnand %p364_p1, %p361_p0 }
   0x8   :  { %369 = shalt.err (!%p366_p2)
}
   0x9   :  { %s370_s23 = scalar_lea.vmem %s28_s13, 512  ;;  %p375_p4 = scmp.lt.s32.totalorder %s28_s13, %s28_s13 }
   0xa   :  { %p371_p3 = scmp.ne.s32.totalorder %s28_s13, %s370_s23  ;;  %p376_p5 = scmp.lt.s32.totalorder %s370_s23, %s370_s23 }
   0xc   :  { %p377_p6 = por %p376_p5, %p375_p4 }
   0xe   :  { %p378_p7 = pnand %p377_p6, %p371_p3 }
  0x10   :  { %381 = shalt.err (!%p378_p7)
}
  0x11   :  { %s432_s24 = smov 128   ;;  %s433_s25 = smov 8  }
  0x12   :  { %33 = dma.hbm_to_vmem [thread:$0]  %s505_s1, 512, %s28_s13, [#allocation5], %s432_s24, %s432_s24, %s433_s25  }
  0x13   :  { %s382_s30 = scalar_lea.hbm %s504_s0, 256 }
  0x14   :  { %p383_p8 = scmp.ne.s32.totalorder %s504_s0, %s382_s30  ;;  %p386_p9 = scmp.lt.u32.totalorder %s382_s30, %s504_s0 }
  0x16   :  { %p388_p10 = pnand %p386_p9, %p383_p8 }
  0x18   :  { %391 = shalt.err (!%p388_p10)
}
  0x19   :  { %s392_s8 = scalar_lea.vmem %s458_s15, 256  ;;  %p397_p12 = scmp.lt.s32.totalorder %s458_s15, %s458_s15 }
  0x1a   :  { %p393_p11 = scmp.ne.s32.totalorder %s458_s15, %s392_s8  ;;  %p398_p13 = scmp.lt.s32.totalorder %s392_s8, %s392_s8 }
  0x1c   :  { %p399_p0 = por %p398_p13, %p397_p12 }
  0x1e   :  { %p400_p1 = pnand %p399_p0, %p393_p11 }
  0x20   :  { %403 = shalt.err (!%p400_p1)
}
  0x21   :  { %21 = dma.hbm_to_vmem [thread:$0]  %s504_s0, 256, %s458_s15, [#allocation3], %s432_s24, %s432_s24, %s433_s25  }
  0x22   :  { %s434_s10 = smov [#allocation6]   ;;  %s404_s14 = scalar_lea.hbm %s506_s2, 128 }
  0x23   :  { %s40_s11 = sshll.u32 %s434_s10, 4  ;;  %p405_p2 = scmp.ne.s32.totalorder %s506_s2, %s404_s14  ;;  %s41_s11 = int_to_ptr.vmem [resolvable:$true] %s40_s11 }
  0x24   :  { %p408_p3 = scmp.lt.u32.totalorder %s404_s14, %s506_s2 }
  0x26   :  { %p410_p4 = pnand %p408_p3, %p405_p2 }
  0x28   :  { %413 = shalt.err (!%p410_p4)
}
  0x29   :  { %s414_s20 = scalar_lea.vmem %s41_s11, 128  ;;  %p419_p6 = scmp.lt.s32.totalorder %s41_s11, %s41_s11 }
  0x2a   :  { %p415_p5 = scmp.ne.s32.totalorder %s41_s11, %s414_s20  ;;  %p420_p7 = scmp.lt.s32.totalorder %s414_s20, %s414_s20 }
  0x2c   :  { %p421_p8 = por %p420_p7, %p419_p6 }
  0x2e   :  { %p422_p9 = pnand %p421_p8, %p415_p5 }
  0x30   :  { %425 = shalt.err (!%p422_p9)
}
  0x31   :  { %43 = dma.hbm_to_vmem [thread:$0]  %s506_s2, 128, %s41_s11, [#allocation5]  }
  0x32   :  { %426 = dma.done.wait [#allocation3], 256  }
  0x33   :  { %427 = vsyncadd [#allocation3], 4294967040 }
  0x34   :  { %428 = dma.done.wait [#allocation5], 640  }
  0x35   :  { %429 = vsyncadd [#allocation5], 4294966656  ;;  %vm59_vm0 = vcmask 777216   ;;  %v53_v0 = vld [vmem:[#allocation2] sm:$0xff]  ;;  %v54_v1 = vld [vmem:[#allocation2 + $0x8] sm:$0xff]  ;;  %v435_v7 = vmov 0.0|0.0  }
  0x36   :  { %vm321_vm1 = vmpackc.low %vm59_vm0, %vm59_vm0  ;;  %v55_v2 = vld [vmem:[#allocation4] sm:$0xff]  ;;  %v320_v3 = vpack.c.bf16 %v54_v1, %v53_v0  ;;  %v56_v4 = vld [vmem:[#allocation4 + $0x8] sm:$0xff]  ;;  %326 = vmatprep.subr.bf16.mxu1 %v435_v7  ;;  %vm436_vm2 = vmmov 0   ;;  %v437_v8 = vmov 0.0   ;;  %vm192_vm3 = vcmask 261120  }
  0x37   :  { %303 = vmatprep.mubr.msk.f32.mxu0 %vm59_vm0, %v55_v2  ;;  %v57_v5 = vld [vmem:[#allocation4 + $0x10] sm:$0xff]  ;;  %v58_v6 = vld [vmem:[#allocation4 + $0x18] sm:$0xff]  ;;  %317 = vmatprep.mubr.msk.f32.mxu1 %vm436_vm2, %v437_v8  ;;  %v191_v39 = vld [vmem:[#allocation6] sm:$0x3f]  ;;  %vm273_vm4 = vcmask 128000  }
  0x38   :  { %322 = vmatprep.subr.msk.bf16.mxu0 %vm321_vm1, %v320_v3 }
  0x39   :  { %325 = vmatpush3.bf16.xpose.msk.msra.mxu0 %vm321_vm1, %v320_v3 }
  0x40   :  { %304 = vmatmul.mubr.msk.f32.vlgmr.msra.gmra.mrb[0].mxu0 %vm59_vm0, %v56_v4 }
  0x41   :  { %306 = vmatprep.mubr.msk.f32.mxu0 %vm59_vm0, %v57_v5 }
  0x44   :  { %307 = vmatmul.mubr.msk.f32.gmra.mrb[2].mxu0 %vm59_vm0, %v58_v6 }
 0x113   :  { %v305_v9 = vpop.f32.mrb[0].mxu0 }
 0x114   :  { %v164_v10 = vsub.f32 0.0, %v305_v9  ;;  %v144_v11 = vpop.f32.mrb[1].mxu0 }
 0x115   :  { %v163_v12 = vsub.f32 0.0, %v144_v11 }
 0x116   :  { %v169_v13 = vmul.f32 1.442695, %v164_v10 }
 0x117   :  { %v167_v14 = vmul.f32 1.442695, %v163_v12  ;;  %v308_v15 = vpop.f32.mrb[2].mxu0 }
 0x118   :  { %340 = vpow2.f32 %v169_v13  ;;  %v166_v16 = vsub.f32 0.0, %v308_v15  ;;  %v154_v17 = vpop.f32.mrb[3].mxu0 }
 0x119   :  { %342 = vpow2.f32 %v167_v14  ;;  %v165_v18 = vsub.f32 0.0, %v154_v17 }
 0x11a   :  { %v173_v19 = vmul.f32 1.442695, %v166_v16 }
 0x11b   :  { %v171_v20 = vmul.f32 1.442695, %v165_v18 }
 0x11c   :  { %344 = vpow2.f32 %v173_v19 }
 0x11d   :  { %346 = vpow2.f32 %v171_v20 }
 0x122   :  { %v341_v21 = vpop.eup %340 }
 0x123   :  { %v343_v22 = vpop.eup %342  ;;  %v176_v23 = vadd.f32 1.0, %v341_v21 }
 0x124   :  { %v175_v24 = vadd.f32 1.0, %v343_v22 }
 0x125   :  { %348 = vrcp.f32 %v176_v23 }
 0x126   :  { %v345_v25 = vpop.eup %344  ;;  %350 = vrcp.f32 %v175_v24 }
 0x127   :  { %v347_v26 = vpop.eup %346  ;;  %v178_v27 = vadd.f32 1.0, %v345_v25 }
 0x128   :  { %v177_v28 = vadd.f32 1.0, %v347_v26 }
 0x129   :  { %352 = vrcp.f32 %v178_v27 }
 0x12a   :  { %354 = vrcp.f32 %v177_v28 }
 0x12f   :  { %v349_v29 = vpop.eup %348 }
 0x130   :  { %v351_v30 = vpop.eup %350  ;;  %v188_v31 = vmul.f32 %v349_v29, %v305_v9 }
 0x131   :  { %v187_v32 = vmul.f32 %v351_v30, %v144_v11 }
 0x133   :  { %v353_v33 = vpop.eup %352  ;;  %v327_v34 = vpack.c.bf16 %v188_v31, %v187_v32 }
 0x134   :  { %v355_v35 = vpop.eup %354  ;;  %v190_v36 = vmul.f32 %v353_v33, %v308_v15 }
 0x135   :  { %v189_v37 = vmul.f32 %v355_v35, %v154_v17  ;;  %328 = vmatpush3.bf16.msra.mxu1 %v327_v34 }
 0x136   :  { %329 = vmatprep.subr.bf16.mxu1 %v435_v7 }
 0x137   :  { %v330_v38 = vpack.c.bf16 %v190_v36, %v189_v37 }
 0x139   :  { %331 = vmatpush3.bf16.msra.mxu1 %v330_v38 }
 0x13c   :  { %318 = vmatmul.mubr.msk.f32.vlgmr.msra.gmra.mrb[0].mxu1 %vm192_vm3, %v191_v39 }
 0x20f   :  { %v262_v40 = vpop.f32.mrb[0].mxu1 }
 0x210   :  { %v266_v41 = vsub.f32 0.0, %v262_v40  ;;  %v319_v42 = vpop.f32.mrb[1].mxu1 }
 0x212   :  { %v267_v43 = vmul.f32 1.442695, %v266_v41 }
 0x214   :  { %356 = vpow2.f32 %v267_v43 }
 0x21e   :  { %v357_v44 = vpop.eup %356 }
 0x21f   :  { %v269_v45 = vadd.f32 1.0, %v357_v44 }
 0x221   :  { %358 = vrcp.f32 %v269_v45 }
 0x22b   :  { %v359_v46 = vpop.eup %358 }
 0x22c   :  { %v272_v47 = vmul.f32 %v359_v46, %v262_v40 }
 0x22e   :  { %274 = vst.msk [vmem:[%s507_s3] sm:$0x3f] %vm273_vm4, %v272_v47 }
 0x22f   :  { %279 = vsyncpa [#allocation3], 1 }
 0x230   :  { %280 = vsyncpa [#allocation5], 1 }

</bundles_post_ra>
